<compile_context>
chip_gen: v6e
topology: v6e:2x2x1
jax: 0.10.0
libtpu: 0.0.40
codegen_flags: <defaults>
</compile_context>

<pallas_src>
import math

import jax
import jax.numpy as jnp
from jax.experimental import pallas as pl
from jax.experimental.pallas import tpu as pltpu


def _attention_kernel(h_ref, m_ref, w_ref, o_ref):
    # h_ref: (TB, S, D) hidden states, native dtype (no full-slab f32 cast)
    # m_ref: (TB, S)    mask (position valid where > 0), original dtype
    # w_ref: (1, D)     attention weight, pre-scaled by 1/sqrt(D), resident across the grid
    # o_ref: (TB, D)    pooled output (H's dtype)
    h = h_ref[...]                                   # (TB, S, D) — stays bf16/f32 as given
    w = w_ref[...].astype(h.dtype)                   # (1, D) tiny cast

    # scores[b, s] = sum_d h[b, s, d] * w_scaled[d]  — VPU multiply, f32 lane-reduce accumulate.
    scores = jnp.sum(h * w, axis=-1, dtype=jnp.float32)          # (TB, S)
    # (1 - float(mask > 0)) * -10000
    scores = scores + jnp.where(m_ref[...] > 0, 0.0, -10000.0)   # (TB, S)

    # softmax over the sequence axis (dim=-2 in the PyTorch module)
    smax = jnp.max(scores, axis=-1, keepdims=True)               # (TB, 1)
    e = jnp.exp(scores - smax)                                   # (TB, S)
    denom = jnp.sum(e, axis=-1, keepdims=True)                   # (TB, 1)
    probs = e / denom                                            # exact: denom is only (TB,1)

    # pooled[b, :] = sum_s probs[b, s] * h[b, s, :]  (== bmm(H^T, probs))
    # Multiply in H's dtype (bf16 VALU on v6e/v7x), accumulate the sublane reduce in f32.
    probs_h = probs[..., None].astype(h.dtype)                   # (TB, S, 1)
    pooled = jnp.sum(h * probs_h, axis=1, dtype=jnp.float32)     # (TB, D)
    o_ref[...] = pooled.astype(o_ref.dtype)


def _vmem_capacity_bytes():
    """Physical VMEM of the current chip; conservative (v7x = 64 MiB) if query fails."""
    try:
        return int(pltpu.get_tpu_info().vmem_capacity_bytes)
    except Exception:
        return 64 << 20


def _choose_batch_tile(batch, seq, hidden, itemsize, vmem_cap):
    """Pick the batch tile TB.

    Constraints:
      * TB divides B (no ragged tiles) and TB % 8 == 0 or TB == B (sublane constraint
        for the (TB, S) mask block and (TB, D) output block).
      * Double-buffered H slab stays <= ~30% of physical VMEM (v7x-safe hard cap).
      * Target ~16 MiB H blocks on 128-MiB-VMEM chips (v5e/v6e), ~8 MiB on v7x, to
        amortize the ~0.35 us per-grid-step overhead.
      * On v7x prefer an even number of grid steps (ideally >= 4) so both TensorCores
        get balanced work under dimension_semantics=("parallel",).
    """
    if vmem_cap >= (96 << 20):        # v5e / v6e: 128 MiB VMEM, 1 TensorCore
        target_bytes = 16 << 20
        pref_steps = 2
    else:                              # v7x: 64 MiB VMEM, 2 TensorCores
        target_bytes = 8 << 20
        pref_steps = 4

    row_bytes = max(1, seq * hidden * itemsize)
    hard_cap = int(0.30 * vmem_cap)

    valid = [tb for tb in range(1, batch + 1)
             if batch % tb == 0 and (tb % 8 == 0 or tb == batch)]
    fit_hard = [tb for tb in valid if tb * row_bytes <= hard_cap]
    if not fit_hard:
        # Even a single row overflows the hard cap; needs a sequence grid axis (see TODO).
        fit_hard = [min(valid)]
    fit = [tb for tb in fit_hard if tb * row_bytes <= target_bytes] or fit_hard

    # Preference order: (even steps >= pref_steps) > (even steps) > anything; within each
    # bucket take the largest tile (fewest steps, biggest DMA).
    for pred in (lambda tb: (batch // tb) >= pref_steps and (batch // tb) % 2 == 0,
                 lambda tb: (batch // tb) % 2 == 0,
                 lambda tb: True):
        cands = [tb for tb in fit if pred(tb)]
        if cands:
            return max(cands)
    return max(fit)


def attention_forward(H, mask, attn_weight):
    """H: (B, S, D), mask: (B, S), attn_weight: (1, D).  Returns (B, D) in H's dtype."""
    B, S, D = H.shape
    # Fold the 1/sqrt(D) scale into the tiny resident weight once (mathematically identical
    # to PyTorch's post-projection scale since the projection is linear).
    w = (attn_weight.reshape(1, D).astype(jnp.float32)) * (1.0 / math.sqrt(float(D)))

    vmem_cap = _vmem_capacity_bytes()
    in_item = H.dtype.itemsize
    TB = _choose_batch_tile(B, S, D, itemsize=in_item, vmem_cap=vmem_cap)
    grid = (B // TB,)

    # Advisory cost: one streaming pass over H (memory-bound).
    bytes_accessed = (B * S * D * in_item
                      + B * S * mask.dtype.itemsize
                      + B * D * in_item
                      + D * 4)
    cost = pl.CostEstimate(flops=4 * B * S * D,
                           transcendentals=B * S,
                           bytes_accessed=bytes_accessed)

    # VMEM budget: double-buffered input/mask/output blocks + resident weight + in-kernel
    # f32 product temps (counted at 4 bytes even for bf16 H), capped at 75% of physical VMEM.
    h_blk = TB * S * D * in_item
    m_blk = TB * S * mask.dtype.itemsize
    o_blk = TB * D * in_item
    temps = 2 * TB * S * D * 4 + 4 * TB * S * 4 + 2 * TB * D * 4 + D * 4
    need = 2 * (h_blk + m_blk + o_blk) + temps
    vmem_limit = int(min(int(0.75 * vmem_cap), max(32 << 20, 2 * need)))

    out = pl.pallas_call(
        _attention_kernel,
        out_shape=jax.ShapeDtypeStruct((B, D), H.dtype),
        grid_spec=pltpu.PrefetchScalarGridSpec(
            num_scalar_prefetch=0,
            grid=grid,
            in_specs=[
                pl.BlockSpec((TB, S, D), lambda b: (b, 0, 0)),   # H slab (streamed)
                pl.BlockSpec((TB, S), lambda b: (b, 0)),         # mask slab (lane-dense)
                pl.BlockSpec((1, D), lambda b: (0, 0)),          # shared pre-scaled weight
            ],
            out_specs=pl.BlockSpec((TB, D), lambda b: (b, 0)),
        ),
        compiler_params=pltpu.CompilerParams(
            dimension_semantics=("parallel",),
            vmem_limit_bytes=vmem_limit,
        ),
        cost_estimate=cost,
    )(H, mask, w)

    return out


def _reference_forward(H, mask, attn_weight):
    """Pure-JAX reference mirroring the PyTorch module."""
    B, S, D = H.shape
    m = (mask > 0).astype(jnp.float32)[..., None]                   # (B, S, 1)
    m = (1.0 - m) * -10000.0
    scores = jnp.einsum("bsd,od->bso", H.astype(jnp.float32),
                        attn_weight.astype(jnp.float32))            # (B, S, 1)
    scores = scores / math.sqrt(float(D)) + m
    probs = jax.nn.softmax(scores, axis=-2)                         # over S
    out = jnp.einsum("bds,bso->bdo",
                     jnp.swapaxes(H.astype(jnp.float32), -1, -2), probs)
    return out.reshape(B, D)


if __name__ == "__main__":
    B, S, D = 2, 8, 32   # batch, seq_len, attention_hidden_size

    key = jax.random.PRNGKey(0)
    k_h, k_m, k_w = jax.random.split(key, 3)

    H = jax.random.normal(k_h, (B, S, D), dtype=jnp.float32)
    # integer 0/1 padding mask, like an attention mask tensor (compare done in-kernel)
    mask = (jax.random.uniform(k_m, (B, S)) > 0.3).astype(jnp.int32)
    # deterministic init of nn.Linear(D, 1, bias=False).weight  -> shape (1, D)
    attn_weight = jax.random.normal(k_w, (1, D), dtype=jnp.float32) / math.sqrt(D)

    out = attention_forward(H, mask, attn_weight)
    out = jax.block_until_ready(out)

    ref = _reference_forward(H, mask, attn_weight)
    assert out.shape == (B, D), out.shape
    assert out.dtype == H.dtype, out.dtype
    # exact reciprocal in the softmax -> tight tolerance
    assert jnp.allclose(out.astype(jnp.float32), ref, atol=1e-4, rtol=1e-4), "mismatch vs reference"

    print("KERNEL_OK")
</pallas_src>

<mosaic_0001>
module attributes {stable_mosaic.version = 11 : i64} {
  func.func @_attention_kernel(%arg0: i32, %arg1: memref<2x8x32xf32, #tpu.memory_space<vmem>>, %arg2: memref<2x8xi32, #tpu.memory_space<vmem>>, %arg3: memref<1x32xf32, #tpu.memory_space<vmem>>, %arg4: memref<2x32xf32, #tpu.memory_space<vmem>>) attributes {dimension_semantics = [#tpu.dimension_semantics<parallel>], iteration_bounds = array<i64: 1>, scalar_prefetch = 0 : i64, scratch_operands = 0 : i64, tpu.core_type = #tpu.core_type<tc>, window_params = [{transform_indices = @transform_0, window_bounds = array<i64: 2, 8, 32>}, {transform_indices = @transform_1, window_bounds = array<i64: 2, 8>}, {pipeline_mode = #tpu.pipeline_mode<synchronous>, transform_indices = @transform_2, window_bounds = array<i64: 1, 32>}, {transform_indices = @transform_3, window_bounds = array<i64: 2, 32>}]} {
    %c0 = arith.constant 0 : index
    %c0_0 = arith.constant 0 : index
    %c0_1 = arith.constant 0 : index
    %0 = vector.load %arg1[%c0, %c0_0, %c0_1] : memref<2x8x32xf32, #tpu.memory_space<vmem>>, vector<2x8x32xf32>
    %c0_2 = arith.constant 0 : index
    %c0_3 = arith.constant 0 : index
    %1 = vector.load %arg3[%c0_2, %c0_3] : memref<1x32xf32, #tpu.memory_space<vmem>>, vector<1x32xf32>
    %2 = vector.shape_cast %1 : vector<1x32xf32> to vector<1x1x32xf32>
    %3 = vector.broadcast %2 : vector<1x1x32xf32> to vector<2x8x32xf32>
    %4 = arith.mulf %0, %3 : vector<2x8x32xf32>
    %cst = arith.constant dense<0.000000e+00> : vector<2x8xf32>
    %5 = vector.multi_reduction <add>, %4, %cst [2] : vector<2x8x32xf32> to vector<2x8xf32>
    %c0_4 = arith.constant 0 : index
    %c0_5 = arith.constant 0 : index
    %6 = vector.load %arg2[%c0_4, %c0_5] : memref<2x8xi32, #tpu.memory_space<vmem>>, vector<2x8xi32>
    %c0_i32 = arith.constant 0 : i32
    %7 = vector.broadcast %c0_i32 : i32 to vector<2x8xi32>
    %8 = arith.cmpi sgt, %6, %7 : vector<2x8xi32>
    %cst_6 = arith.constant 0.000000e+00 : f32
    %cst_7 = arith.constant -1.000000e+04 : f32
    %9 = vector.broadcast %cst_6 : f32 to vector<2x8xf32>
    %10 = vector.broadcast %cst_7 : f32 to vector<2x8xf32>
    %11 = arith.select %8, %9, %10 : vector<2x8xi1>, vector<2x8xf32>
    %12 = arith.addf %5, %11 : vector<2x8xf32>
    %cst_8 = arith.constant dense<0xFF800000> : vector<2xf32>
    %13 = vector.multi_reduction <maximumf>, %12, %cst_8 [1] : vector<2x8xf32> to vector<2xf32>
    %14 = vector.shape_cast %13 : vector<2xf32> to vector<2x1xf32>
    %15 = vector.broadcast %14 : vector<2x1xf32> to vector<2x8xf32>
    %16 = arith.subf %12, %15 : vector<2x8xf32>
    %17 = math.exp %16 : vector<2x8xf32>
    %cst_9 = arith.constant dense<0.000000e+00> : vector<2xf32>
    %18 = vector.multi_reduction <add>, %17, %cst_9 [1] : vector<2x8xf32> to vector<2xf32>
    %19 = vector.shape_cast %18 : vector<2xf32> to vector<2x1xf32>
    %20 = vector.broadcast %19 : vector<2x1xf32> to vector<2x8xf32>
    %21 = arith.divf %17, %20 : vector<2x8xf32>
    %22 = vector.shape_cast %21 : vector<2x8xf32> to vector<2x8x1xf32>
    %23 = vector.broadcast %22 : vector<2x8x1xf32> to vector<2x8x32xf32>
    %24 = arith.mulf %0, %23 : vector<2x8x32xf32>
    %cst_10 = arith.constant dense<0.000000e+00> : vector<2x32xf32>
    %25 = vector.multi_reduction <add>, %24, %cst_10 [1] : vector<2x8x32xf32> to vector<2x32xf32>
    %c0_11 = arith.constant 0 : index
    %c0_12 = arith.constant 0 : index
    %26 = vector.load %arg4[%c0_11, %c0_12] : memref<2x32xf32, #tpu.memory_space<vmem>>, vector<2x32xf32>
    tpu.vector_store %arg4[%c0_11, %c0_12], %25 {strides = array<i32>} : memref<2x32xf32, #tpu.memory_space<vmem>>, vector<2x32xf32>,
    return
  }
  func.func @transform_0(%arg0: i32) -> (i32, i32, i32) {
    %c0_i32 = arith.constant 0 : i32
    %c0_i32_0 = arith.constant 0 : i32
    %c0_i32_1 = arith.constant 0 : i32
    return %arg0, %c0_i32, %c0_i32_0 : i32, i32, i32
  }
  func.func @transform_1(%arg0: i32) -> (i32, i32) {
    %c0_i32 = arith.constant 0 : i32
    %c0_i32_0 = arith.constant 0 : i32
    return %arg0, %c0_i32 : i32, i32
  }
  func.func @transform_2(%arg0: i32) -> (i32, i32) {
    %c0_i32 = arith.constant 0 : i32
    %c0_i32_0 = arith.constant 0 : i32
    %c0_i32_1 = arith.constant 0 : i32
    return %c0_i32, %c0_i32_0 : i32, i32
  }
  func.func @transform_3(%arg0: i32) -> (i32, i32) {
    %c0_i32 = arith.constant 0 : i32
    %c0_i32_0 = arith.constant 0 : i32
    return %arg0, %c0_i32 : i32, i32
  }
}

</mosaic_0001>

<bundles_post_ra>
// kernel: tpu_custom_call.1
= control target key start
LH: loop header
LB: loop body
LE: loop exit
PB: predicated region body
PF: predicated region fallthrough
CT: control target
= control target key end

     0   :  { %8 = vsyncpa [#allocation3], 0  ;;  %s347_s0 = inlined_call_operand.hbm [shape: f32[2,8,32], index: 0, kind: input, shape index: {}]   ;;  %s348_s1 = inlined_call_operand.hbm [shape: s32[2,8], index: 1, kind: input, shape index: {}]   ;;  %s349_s2 = inlined_call_operand.vmem [shape: f32[1,32], index: 2, kind: input, shape index: {}]   ;;  %s350_s3 = inlined_call_operand.hbm [shape: f32[2,32], index: 3, kind: output, shape index: {}]  }
   0x1   :  { %9 = vsyncpa [#allocation6], 0 }
   0x2   :  { %10 = vsyncpa [#allocation4], 0  ;;  %s291_s12 = smov [#allocation2]  }
   0x3   :  { %s16_s13 = sshll.u32 %s291_s12, 4  ;;  %s17_s13 = int_to_ptr.vmem [resolvable:$true] %s16_s13 }
   0x4   :  { %s233_s14 = scalar_lea.vmem %s17_s13, 256  ;;  %p238_p1 = scmp.lt.s32.totalorder %s17_s13, %s17_s13 }
   0x5   :  { %p234_p0 = scmp.ne.s32.totalorder %s17_s13, %s233_s14  ;;  %p239_p2 = scmp.lt.s32.totalorder %s233_s14, %s233_s14 }
   0x7   :  { %p240_p3 = por %p239_p2, %p238_p1 }
   0x9   :  { %p241_p4 = pnand %p240_p3, %p234_p0 }
   0xb   :  { %244 = shalt.err (!%p241_p4)
}
   0xc   :  { %s292_s15 = smov 128   ;;  %s293_s16 = smov 8  }
   0xd   :  { %22 = dma.hbm_to_vmem [thread:$0]  %s347_s0, 256, %s17_s13, [#allocation3], %s292_s15, %s292_s15, %s293_s16  }
   0xe   :  { %s294_s19 = smov [#allocation5]  }
   0xf   :  { %s29_s20 = sshll.u32 %s294_s19, 4  ;;  %s30_s20 = int_to_ptr.vmem [resolvable:$true] %s29_s20 }
  0x10   :  { %s253_s21 = scalar_lea.vmem %s30_s20, 32  ;;  %p258_p6 = scmp.lt.s32.totalorder %s30_s20, %s30_s20 }
  0x11   :  { %p254_p5 = scmp.ne.s32.totalorder %s30_s20, %s253_s21  ;;  %p259_p7 = scmp.lt.s32.totalorder %s253_s21, %s253_s21 }
  0x13   :  { %p260_p8 = por %p259_p7, %p258_p6 }
  0x15   :  { %p261_p9 = pnand %p260_p8, %p254_p5 }
  0x17   :  { %264 = shalt.err (!%p261_p9)
}
  0x18   :  { %32 = dma.hbm_to_vmem [thread:$0]  %s348_s1, 32, %s30_s20, [#allocation6]  }
  0x19   :  { %285 = dma.done.wait [#allocation3], 256  }
  0x1a   :  { %286 = vsyncadd [#allocation3], 4294967040 }
  0x1b   :  { %287 = dma.done.wait [#allocation6], 32  }
  0x1c   :  { %288 = vsyncadd [#allocation6], 4294967264  ;;  %v63_v0 = vlaneseq  ;;  %vm52_vm0 = vcmask 261120   ;;  %v324_v2 = vld [vmem:[#allocation2] sm:$0xff]  ;;  %v329_v4 = vld [vmem:[#allocation2 + $0x8] sm:$0xff]  ;;  %v295_v11 = vmov -10000.0  }
  0x1d   :  { %v207_v3 = vld [vmem:[%s349_s2] ss:$0 sm:$0xff]  ;;  %v59_v8 = vld [vmem:[#allocation5] sm:$0x3]  ;;  %v296_v16 = vmov 0   ;;  %vm99_vm2 = vcmask 1041409  }
  0x1e   :  { %v64_v1 = vshrl.u32 %v63_v0, 7  ;;  %v50_v6 = vmul.f32 %v207_v3, %v324_v2  ;;  %v51_v7 = vmul.f32 %v207_v3, %v329_v4  ;;  %vm60_vm1 = vcmp.gt.s32.totalorder %v59_v8, 0  ;;  %215 = vset.pattern.permute.xlu0 %v296_v16  ;;  %216 = vset.pattern.permute.xlu1 %v296_v16  ;;  %s297_s1 = smov [#allocation7]  }
  0x1f   :  { %v61_v12 = vsel %vm60_vm1, 0.0, %v295_v11  ;;  %v90_v17 = vand.u32 127, %v63_v0  ;;  %vm102_vm3 = vcmask 58368   ;;  %s197_s2 = sshll.u32 %s297_s1, 4  ;;  %vm189_vm4 = vcmask 254976   ;;  %s198_s2 = int_to_ptr.vmem [resolvable:$true] %s197_s2 }
  0x20   :  { %v65_v5 = vsub.s32 0, %v64_v1  ;;  %v72_v9 = vsub.s32 1, %v64_v1  ;;  %v53_v10 = vsel %vm52_vm0, %v50_v6, 0.0  ;;  %v56_v14 = vsel %vm52_vm0, %v51_v7, 0.0  ;;  %s265_s25 = scalar_lea.vmem %s198_s2, 32  ;;  %p270_p11 = scmp.lt.s32.totalorder %s198_s2, %s198_s2 }
  0x21   :  { %54 = vadd.xlane.f32.xlu0 %v53_v10  ;;  %v93_v18 = vsub.s32 %v90_v17, %v64_v1  ;;  %p266_p10 = scmp.ne.s32.totalorder %s198_s2, %s265_s25  ;;  %p271_p12 = scmp.lt.s32.totalorder %s265_s25, %s265_s25 }
  0x22   :  { %v66_v13 = vrot.slane %v61_v12, %v65_v5  ;;  %v73_v15 = vrot.slane %v61_v12, %v72_v9 }
  0x23   :  { %p272_p13 = por %p271_p12, %p270_p11 }
  0x24   :  { %68 = vbcast.lane.b32.xlu1 %v66_v13, 256 }
  0x25   :  { %57 = vadd.xlane.f32.xlu0 %v56_v14  ;;  %p273_p0 = pnand %p272_p13, %p266_p10 }
  0x28   :  { %75 = vbcast.lane.b32.xlu1 %v73_v15, 256 }
  0x96   :  { %v69_v19 = vpop.permute.xlu1 %68 }
  0x9a   :  { %v76_v22 = vpop.permute.xlu1 %75 }
  0xaa   :  { %v55_v20 = vpop.xlane.xlu0 %54 }
  0xab   :  { %v79_v21 = vadd.f32 %v69_v19, %v55_v20 }
  0xad   :  { %84 = vperm.xlu0 %215, %v79_v21  }
  0xae   :  { %v58_v23 = vpop.xlane.xlu0 %57 }
  0xaf   :  { %v80_v24 = vadd.f32 %v76_v22, %v58_v23 }
  0xb1   :  { %87 = vperm.xlu1 %216, %v80_v24  }
 0x128   :  { %v85_v25 = vpop.permute.xlu0 %84 }
 0x129   :  { %v94_v27 = vrot.slane %v85_v25, %v93_v18 }
 0x12c   :  { %v88_v26 = vpop.permute.xlu1 %87 }
 0x12d   :  { %v98_v28 = vrot.slane %v88_v26, %v93_v18 }
 0x12f   :  { %v100_v29 = vsel %vm99_vm2, %v98_v28, %v94_v27 }
 0x130   :  { %v103_v30 = vsel %vm102_vm3, %v100_v29, -inf }
 0x131   :  { %104 = vmax.xlane.f32.xlu1 %v103_v30 }
 0x1ba   :  { %v105_v31 = vpop.xlane.xlu1 %104 }
 0x1bb   :  { %v110_v32 = vrot.slane %v105_v31, %v65_v5  ;;  %v114_v33 = vrot.slane %v105_v31, %v72_v9 }
 0x1bd   :  { %v117_v34 = vsub.f32 %v79_v21, %v110_v32  ;;  %v118_v35 = vsub.f32 %v80_v24, %v114_v33 }
 0x1bf   :  { %v119_v36 = vmul.f32 1.442695, %v117_v34  ;;  %v121_v37 = vmul.f32 1.442695, %v118_v35 }
 0x1c1   :  { %217 = vpow2.f32 %v119_v36 }
 0x1c2   :  { %219 = vpow2.f32 %v121_v37 }
 0x1ce   :  { %v218_v38 = vpop.eup %217 }
 0x1cf   :  { %v220_v39 = vpop.eup %219  ;;  %126 = vperm.xlu1 %216, %v218_v38  }
 0x1d0   :  { %129 = vperm.xlu0 %215, %v220_v39  }
 0x24a   :  { %v127_v40 = vpop.permute.xlu1 %126 }
 0x24b   :  { %v130_v41 = vpop.permute.xlu0 %129  ;;  %v134_v42 = vrot.slane %v127_v40, %v93_v18 }
 0x24c   :  { %v138_v43 = vrot.slane %v130_v41, %v93_v18 }
 0x24e   :  { %v139_v44 = vsel %vm99_vm2, %v138_v43, %v134_v42 }
 0x24f   :  { %v141_v45 = vsel %vm102_vm3, %v139_v44, 0.0 }
 0x250   :  { %142 = vadd.xlane.f32.xlu0 %v141_v45 }
 0x2d9   :  { %v143_v46 = vpop.xlane.xlu0 %142 }
 0x2da   :  { %v148_v47 = vrot.slane %v143_v46, %v65_v5  ;;  %v152_v48 = vrot.slane %v143_v46, %v72_v9 }
 0x2dc   :  { %221 = vrcp.f32 %v148_v47 }
 0x2dd   :  { %223 = vrcp.f32 %v152_v48 }
 0x2e9   :  { %v222_v49 = vpop.eup %221 }
 0x2ea   :  { %v156_v50 = vmul.f32 %v222_v49, %v218_v38  ;;  %v224_v51 = vpop.eup %223 }
 0x2eb   :  { %v158_v52 = vmul.f32 %v224_v51, %v220_v39 }
 0x2ec   :  { %161 = vperm.xlu1 %216, %v156_v50  }
 0x2f0   :  { %166 = vperm.xlu1 %216, %v158_v52  }
 0x367   :  { %v162_v53 = vpop.permute.xlu1 %161 }
 0x368   :  { %v169_v54 = vmul.f32 %v162_v53, %v324_v2 }
 0x36a   :  { %v171_v55 = vsel %vm52_vm0, %v169_v54, 0.0 }
 0x36b   :  { %v172_v56 = vrot.slane %v171_v55, 4  ;;  %v167_v57 = vpop.permute.xlu1 %166 }
 0x36c   :  { %v170_v58 = vmul.f32 %v167_v57, %v329_v4 }
 0x36d   :  { %v173_v59 = vadd.f32 %v172_v56, %v171_v55 }
 0x36e   :  { %v178_v60 = vsel %vm52_vm0, %v170_v58, 0.0 }
 0x36f   :  { %v174_v61 = vrot.slane %v173_v59, 2  ;;  %v179_v62 = vrot.slane %v178_v60, 4 }
 0x371   :  { %v175_v63 = vadd.f32 %v174_v61, %v173_v59  ;;  %v180_v0 = vadd.f32 %v179_v62, %v178_v60 }
 0x373   :  { %v181_v1 = vrot.slane %v180_v0, 2  ;;  %v176_v3 = vrot.slane %v175_v63, 1 }
 0x375   :  { %v182_v5 = vadd.f32 %v181_v1, %v180_v0  ;;  %v177_v2 = vadd.f32 %v176_v3, %v175_v63 }
 0x377   :  { %v183_v6 = vrot.slane %v182_v5, 1 }
 0x379   :  { %v184_v7 = vadd.f32 %v183_v6, %v182_v5 }
 0x37b   :  { %v187_v8 = vsel %vm99_vm2, %v184_v7, %v177_v2 }
 0x37c   :  { %190 = vst.msk [vmem:[#allocation7] sm:$0x3] %vm189_vm4, %v187_v8 }
 0x37d   :  { %276 = shalt.err (!%p273_p0)
}
 0x37e   :  { %200 = dma.vmem_to_hbm [thread:$0]  %s198_s2, 32, %s350_s3, [#allocation4]  }
 0x37f   :  { %289 = dma.done.wait [#allocation4], 32  }
 0x380   :  { %290 = vsyncadd [#allocation4], 4294967264 }
 0x381   :  { %204 = vsyncpa [#allocation3], 1 }
 0x382   :  { %205 = vsyncpa [#allocation6], 1 }
 0x383   :  { %206 = vsyncpa [#allocation4], 1 }

</bundles_post_ra>
